<compile_context>
chip_gen: v7x
topology: tpu7x:2x2x1
jax: 0.10.0
libtpu: 0.0.40
codegen_flags: <defaults>
</compile_context>

<pallas_src>
import numpy as np
import jax
import jax.numpy as jnp
from jax.experimental import pallas as pl
from jax.experimental.pallas import tpu as pltpu


# ---------------------------------------------------------------------------
# Parameter construction (mirrors SpatialEncoding.__init__, deterministic)
# ---------------------------------------------------------------------------
def make_spatial_encoding_emb(in_dim: int, out_dim: int, sigma: float = 6.0) -> jnp.ndarray:
    assert out_dim % (2 * in_dim) == 0, "dimension must be divisible"
    n = out_dim // 2 // in_dim
    m = 2.0 ** np.linspace(0, sigma, n)                                          # (n,)
    m = np.stack([m] + [np.zeros_like(m)] * (in_dim - 1), axis=-1)               # (n, in_dim)
    m = np.concatenate([np.roll(m, i, axis=-1) for i in range(in_dim)], axis=0)  # (H, in_dim)
    return jnp.asarray(m, dtype=jnp.float32)                                     # emb: (out_dim//2, in_dim)


# ---------------------------------------------------------------------------
# Kernel bodies
# ---------------------------------------------------------------------------
def _compute_y(p_ref, emb_t_ref):
    """y = p @ emb.T, with emb pre-transposed to (in_dim, H)."""
    in_dim = p_ref.shape[-1]
    if in_dim <= 8:
        # Tiny contraction: do it on the VPU (broadcast multiply-add), skip the MXU
        # (K=2..8 would pad to 128/256 on the MXU and pay relayout + MRF pop for nothing).
        y = p_ref[:, 0:1] * emb_t_ref[0:1, :]
        for k in range(1, in_dim):
            y = y + p_ref[:, k : k + 1] * emb_t_ref[k : k + 1, :]
        return y
    return jnp.dot(p_ref[...], emb_t_ref[...], preferred_element_type=jnp.float32)


def _spatial_enc_kernel(p_ref, emb_t_ref, o_ref):
    # p_ref: (TM, in_dim)  emb_t_ref: (in_dim, H)  o_ref: (TM, 2H)
    H = emb_t_ref.shape[-1]
    y = _compute_y(p_ref, emb_t_ref)
    o_ref[:, :H] = jnp.sin(y).astype(o_ref.dtype)
    o_ref[:, H:] = jnp.cos(y).astype(o_ref.dtype)


def _spatial_enc_cat_kernel(cat_ref, p_ref, emb_t_ref, o_ref):
    # cat_ref: (TM, C)  p_ref: (TM, in_dim)  emb_t_ref: (in_dim, H)  o_ref: (TM, C+2H)
    C = cat_ref.shape[-1]
    H = emb_t_ref.shape[-1]
    y = _compute_y(p_ref, emb_t_ref)
    o_ref[:, :C] = cat_ref[...].astype(o_ref.dtype)
    o_ref[:, C : C + H] = jnp.sin(y).astype(o_ref.dtype)
    o_ref[:, C + H :] = jnp.cos(y).astype(o_ref.dtype)


# ---------------------------------------------------------------------------
# Wrapper
# ---------------------------------------------------------------------------
def _pick_tile_m(M: int, out_cols: int, *, target_bytes: int = 1 << 20, max_rows: int = 8192) -> int:
    """Row tile sized so the output tile is ~1 MiB (fits well within scoped VMEM on
    v5e/v6e/v7x even with double buffering), multiple of 8, capped at max_rows."""
    rows = max(8, target_bytes // max(1, out_cols * 4))
    rows = min(rows, max_rows)
    rows = max(8, (rows // 8) * 8)
    m_pad8 = ((M + 7) // 8) * 8
    return min(rows, m_pad8)


def spatial_encoding(p, emb, cat_input=None, out_dtype=jnp.float32):
    """JAX/Pallas equivalent of SpatialEncoding.forward.

    p:         (..., in_dim) float
    emb:       (out_dim//2, in_dim) float32  (from make_spatial_encoding_emb)
    cat_input: optional (..., C), concatenated in front of [sin, cos]
    out_dtype: output dtype (float32 default; bfloat16 halves HBM write-back)
    returns:   (..., [C +] out_dim)
    """
    H = int(emb.shape[0])
    if H == 0:                        # matches `if not self.out_dim: return cat_input`
        return cat_input

    lead = p.shape[:-1]
    in_dim = int(p.shape[-1])
    M = int(np.prod(lead)) if lead else 1

    p2 = p.reshape(M, in_dim).astype(jnp.float32)
    emb_t = jnp.asarray(emb, jnp.float32).T      # (in_dim, H): transpose once, outside the kernel

    C = 0 if cat_input is None else int(cat_input.shape[-1])
    out_cols = C + 2 * H

    tile_m = _pick_tile_m(M, out_cols)
    m_pad = int(pl.cdiv(M, tile_m)) * tile_m
    if m_pad != M:
        p2 = jnp.pad(p2, ((0, m_pad - M), (0, 0)))

    grid = (m_pad // tile_m,)
    p_spec = pl.BlockSpec((tile_m, in_dim), lambda i: (i, 0))
    emb_spec = pl.BlockSpec((in_dim, H), lambda i: (0, 0))
    out_spec = pl.BlockSpec((tile_m, out_cols), lambda i: (i, 0))
    cparams = pltpu.CompilerParams(dimension_semantics=("parallel",))

    if cat_input is None:
        out = pl.pallas_call(
            _spatial_enc_kernel,
            out_shape=jax.ShapeDtypeStruct((m_pad, out_cols), out_dtype),
            grid=grid,
            in_specs=[p_spec, emb_spec],
            out_specs=out_spec,
            compiler_params=cparams,
        )(p2, emb_t)
    else:
        c2 = cat_input.reshape(M, C).astype(out_dtype)
        if m_pad != M:
            c2 = jnp.pad(c2, ((0, m_pad - M), (0, 0)))
        cat_spec = pl.BlockSpec((tile_m, C), lambda i: (i, 0))
        out = pl.pallas_call(
            _spatial_enc_cat_kernel,
            out_shape=jax.ShapeDtypeStruct((m_pad, out_cols), out_dtype),
            grid=grid,
            in_specs=[cat_spec, p_spec, emb_spec],
            out_specs=out_spec,
            compiler_params=cparams,
        )(c2, p2, emb_t)

    if m_pad != M:
        out = out[:M]
    return out.reshape(*lead, out_cols)


# ---------------------------------------------------------------------------
# Pure-JAX reference
# ---------------------------------------------------------------------------
def spatial_encoding_ref(p, emb, cat_input=None):
    y = jnp.matmul(p, emb.T)
    if cat_input is not None:
        return jnp.concatenate([cat_input, jnp.sin(y), jnp.cos(y)], axis=-1)
    return jnp.concatenate([jnp.sin(y), jnp.cos(y)], axis=-1)


if __name__ == "__main__":
    in_dim, out_dim, sigma = 2, 32, 6
    emb = make_spatial_encoding_emb(in_dim, out_dim, sigma)   # (16, 2)

    key = jax.random.PRNGKey(0)
    k1, k2, k3 = jax.random.split(key, 3)

    # Case 1: batch=2, seq=8, no cat_input
    batch, seq = 2, 8
    p = jax.random.normal(k1, (batch, seq, in_dim), dtype=jnp.float32)
    out = jax.block_until_ready(spatial_encoding(p, emb))
    ref = spatial_encoding_ref(p, emb)
    np.testing.assert_allclose(np.asarray(out), np.asarray(ref), rtol=1e-5, atol=1e-5)
    assert out.shape == (batch, seq, out_dim)

    # Case 2: with cat_input (C=4)
    cat_in = jax.random.normal(k2, (batch, seq, 4), dtype=jnp.float32)
    out_c = jax.block_until_ready(spatial_encoding(p, emb, cat_input=cat_in))
    ref_c = spatial_encoding_ref(p, emb, cat_input=cat_in)
    np.testing.assert_allclose(np.asarray(out_c), np.asarray(ref_c), rtol=1e-5, atol=1e-5)
    assert out_c.shape == (batch, seq, 4 + out_dim)

    # Case 3: ragged row count (M=21, not a multiple of 8) exercises pad + tail slice
    p3 = jax.random.normal(k3, (3, 7, in_dim), dtype=jnp.float32)
    out3 = jax.block_until_ready(spatial_encoding(p3, emb))
    ref3 = spatial_encoding_ref(p3, emb)
    np.testing.assert_allclose(np.asarray(out3), np.asarray(ref3), rtol=1e-5, atol=1e-5)
    assert out3.shape == (3, 7, out_dim)

    print("KERNEL_OK")
</pallas_src>

<mosaic_0001>
module attributes {stable_mosaic.version = 11 : i64} {
  func.func @_spatial_enc_kernel(%arg0: i32, %arg1: memref<16x2xf32, #tpu.memory_space<vmem>>, %arg2: memref<2x16xf32, #tpu.memory_space<vmem>>, %arg3: memref<16x32xf32, #tpu.memory_space<vmem>>) attributes {dimension_semantics = [#tpu.dimension_semantics<parallel>], iteration_bounds = array<i64: 1>, scalar_prefetch = 0 : i64, scratch_operands = 0 : i64, tpu.core_type = #tpu.core_type<tc>, window_params = [{transform_indices = @transform_0, window_bounds = array<i64: 16, 2>}, {pipeline_mode = #tpu.pipeline_mode<synchronous>, transform_indices = @transform_1, window_bounds = array<i64: 2, 16>}, {transform_indices = @transform_2, window_bounds = array<i64: 16, 32>}]} {
    %c0 = arith.constant 0 : index
    %c0_0 = arith.constant 0 : index
    %0 = vector.load %arg1[%c0, %c0_0] : memref<16x2xf32, #tpu.memory_space<vmem>>, vector<16x1xf32>
    %c0_1 = arith.constant 0 : index
    %c0_2 = arith.constant 0 : index
    %1 = vector.load %arg2[%c0_1, %c0_2] : memref<2x16xf32, #tpu.memory_space<vmem>>, vector<1x16xf32>
    %2 = vector.broadcast %0 : vector<16x1xf32> to vector<16x16xf32>
    %3 = vector.broadcast %1 : vector<1x16xf32> to vector<16x16xf32>
    %4 = arith.mulf %2, %3 : vector<16x16xf32>
    %c0_3 = arith.constant 0 : index
    %c1 = arith.constant 1 : index
    %5 = vector.load %arg1[%c0_3, %c1] : memref<16x2xf32, #tpu.memory_space<vmem>>, vector<16x1xf32>
    %c1_4 = arith.constant 1 : index
    %c0_5 = arith.constant 0 : index
    %6 = vector.load %arg2[%c1_4, %c0_5] : memref<2x16xf32, #tpu.memory_space<vmem>>, vector<1x16xf32>
    %7 = vector.broadcast %5 : vector<16x1xf32> to vector<16x16xf32>
    %8 = vector.broadcast %6 : vector<1x16xf32> to vector<16x16xf32>
    %9 = arith.mulf %7, %8 : vector<16x16xf32>
    %10 = arith.addf %4, %9 : vector<16x16xf32>
    %11 = math.sin %10 : vector<16x16xf32>
    %c0_6 = arith.constant 0 : index
    %c0_7 = arith.constant 0 : index
    %12 = vector.load %arg3[%c0_6, %c0_7] : memref<16x32xf32, #tpu.memory_space<vmem>>, vector<16x16xf32>
    tpu.vector_store %arg3[%c0_6, %c0_7], %11 {strides = array<i32>} : memref<16x32xf32, #tpu.memory_space<vmem>>, vector<16x16xf32>,
    %13 = math.cos %10 : vector<16x16xf32>
    %c0_8 = arith.constant 0 : index
    %c16 = arith.constant 16 : index
    %14 = vector.load %arg3[%c0_8, %c16] : memref<16x32xf32, #tpu.memory_space<vmem>>, vector<16x16xf32>
    tpu.vector_store %arg3[%c0_8, %c16], %13 {strides = array<i32>} : memref<16x32xf32, #tpu.memory_space<vmem>>, vector<16x16xf32>,
    return
  }
  func.func @transform_0(%arg0: i32) -> (i32, i32) {
    %c0_i32 = arith.constant 0 : i32
    %c0_i32_0 = arith.constant 0 : i32
    return %arg0, %c0_i32 : i32, i32
  }
  func.func @transform_1(%arg0: i32) -> (i32, i32) {
    %c0_i32 = arith.constant 0 : i32
    %c0_i32_0 = arith.constant 0 : i32
    %c0_i32_1 = arith.constant 0 : i32
    return %c0_i32, %c0_i32_0 : i32, i32
  }
  func.func @transform_2(%arg0: i32) -> (i32, i32) {
    %c0_i32 = arith.constant 0 : i32
    %c0_i32_0 = arith.constant 0 : i32
    return %arg0, %c0_i32 : i32, i32
  }
}

</mosaic_0001>

<bundles_post_ra>
// kernel: tpu_custom_call.1
= control target key start
LH: loop header
LB: loop body
LE: loop exit
PB: predicated region body
PF: predicated region fallthrough
CT: control target
= control target key end

     0   :  { %v565_v1 = vmov 1   ;;  %v566_v2 = vmov 0   ;;  %s699_s0 = inlined_call_operand.vmem [shape: f32[16,2], index: 0, kind: input, shape index: {}]   ;;  %s700_s1 = inlined_call_operand.vmem [shape: f32[2,16], index: 1, kind: input, shape index: {}]   ;;  %s701_s2 = inlined_call_operand.hbm [shape: f32[16,32], index: 2, kind: output, shape index: {}]  }
   0x1   :  { %v12_v0 = vld [vmem:[%s699_s0] sm:$0xff]  ;;  %531 = vset.pattern.permute.xlu1 %v565_v1  ;;  %530 = vset.pattern.permute.xlu0 %v566_v2 }
   0x2   :  { %7 = vsyncpa [#allocation3], 0  ;;  %33 = vperm.xlu1 %531, %v12_v0   ;;  %17 = vperm.xlu0 %530, %v12_v0   ;;  %v13_v3 = vld [vmem:[%s699_s0 + $0x8] sm:$0xff]  ;;  %v493_v4 = vld [vmem:[%s700_s1 + $0x1] ss:$0 sm:$0xff]  ;;  %s573_s0 = smov 16  }
   0x3   :  { %v492_v5 = vld [vmem:[%s700_s1] ss:$0 sm:$0xff]  ;;  %v567_v34 = vmov 2102212464   ;;  %v568_v36 = vmov 920167782  }
   0x4   :  { %v569_v40 = vmov 1326507024   ;;  %v570_v44 = vmov 683565275   ;;  %v571_v46 = vmov 2475754826  }
   0x5   :  { %v572_v48 = vmov 2131351028   ;;  %s574_s1 = smov [#allocation2]  }
   0x6   :  { %37 = vperm.xlu1 %531, %v13_v3   ;;  %22 = vperm.xlu0 %530, %v13_v3   ;;  %s481_s17 = sshll.u32 %s574_s1, 4  ;;  %s482_s17 = int_to_ptr.vmem [resolvable:$true] %s481_s17 }
   0x7   :  { %s541_s18 = scalar_lea.vmem %s482_s17, 256  ;;  %p546_p1 = scmp.lt.s32.totalorder %s482_s17, %s482_s17 }
   0x8   :  { %p542_p0 = scmp.ne.s32.totalorder %s482_s17, %s541_s18  ;;  %p547_p2 = scmp.lt.s32.totalorder %s541_s18, %s541_s18 }
   0xa   :  { %532 = vset.pattern.permute.xlu0 %v565_v1  ;;  %p548_p3 = por %p547_p2, %p546_p1 }
   0xc   :  { %p549_p4 = pnand %p548_p3, %p542_p0 }
  0x81   :  { %v34_v6 = vpop.permute.xlu1 %33  ;;  %v18_v7 = vpop.permute.xlu0 %17 }
  0x82   :  { %v44_v8 = vmul.f32 %v493_v4, %v34_v6  ;;  %v29_v9 = vmul.f32 %v492_v5, %v18_v7 }
  0x84   :  { %v604_v10 = vadd.f32 %v44_v8, %v29_v9 }
  0x85   :  { %v38_v11 = vpop.permute.xlu1 %37  ;;  %v23_v12 = vpop.permute.xlu0 %22 }
  0x86   :  { %v51_v13 = vand.u32 2139095040, %v604_v10  ;;  %v45_v14 = vmul.f32 %v493_v4, %v38_v11  ;;  %v30_v15 = vmul.f32 %v492_v5, %v23_v12  ;;  %v48_v16 = vand.u32 2147483647, %v604_v10 }
  0x87   :  { %vm50_vm14 = vcmp.lt.s32.totalorder %v604_v10, 0 }
  0x88   :  { %v52_v17 = vshrl.u32 %v51_v13, 23  ;;  %v608_v18 = vadd.f32 %v45_v14, %v30_v15  ;;  %v55_v21 = vand.u32 8388607, %v48_v16  ;;  %vm49_vm15 = vcmp.le.f32.partialorder %v48_v16, 0.7853982 }
  0x8a   :  { %v494_v19 = vadd.s32 4294967169, %v52_v17  ;;  %v155_v20 = vand.u32 2139095040, %v608_v18  ;;  %v152_v22 = vand.u32 2147483647, %v608_v18  ;;  %v56_v26 = vor.u32 8388608, %v55_v21 }
  0x8c   :  { %v58_v23 = vadd.s32 1, %v494_v19  ;;  %v156_v24 = vshrl.u32 %v155_v20, 23  ;;  %v616_v28 = vand.u32 8388607, %v152_v22  ;;  %v618_v33 = vshll.u32 %v56_v26, 8 }
  0x8e   :  { %vm59_vm0 = vcmp.gt.s32.totalorder %v58_v23, 0  ;;  %v498_v25 = vadd.s32 4294967169, %v156_v24  ;;  %v160_v38 = vor.u32 8388608, %v616_v28 }
  0x8f   :  { %v60_v27 = vsel %vm59_vm0, %v58_v23, 0  ;;  %vm154_vm0 = vcmp.lt.s32.totalorder %v608_v18, 0 }
  0x90   :  { %v61_v29 = vshrl.u32 %v60_v27, 5  ;;  %v62_v30 = vand.u32 31, %v60_v27  ;;  %v162_v31 = vadd.s32 1, %v498_v25 }
  0x92   :  { %v63_v32 = vsub.s32 32, %v62_v30  ;;  %v74_v35 = vshll.u32 %v567_v34, %v62_v30  ;;  %v77_v37 = vshll.u32 %v568_v36, %v62_v30  ;;  %vm163_vm1 = vcmp.gt.s32.totalorder %v162_v31, 0 }
  0x93   :  { %vm83_vm2 = vcmp.lt.s32.totalorder %v61_v29, 4  ;;  %v164_v42 = vsel %vm163_vm1, %v162_v31, 0  ;;  %v65_v45 = vshll.u32 %v570_v44, %v62_v30  ;;  %v68_v52 = vshll.u32 %v571_v46, %v62_v30 }
  0x94   :  { %v75_v39 = vshrl.u32 %v568_v36, %v63_v32  ;;  %v78_v41 = vshrl.u32 %v569_v40, %v63_v32  ;;  %v166_v43 = vand.u32 31, %v164_v42  ;;  %v66_v47 = vshrl.u32 %v571_v46, %v63_v32 }
  0x95   :  { %v69_v49 = vshrl.u32 %v572_v48, %v63_v32  ;;  %v72_v53 = vshrl.u32 %v567_v34, %v63_v32  ;;  %v622_v54 = vshrl.u32 %v164_v42, 5  ;;  %v71_v56 = vshll.u32 %v572_v48, %v62_v30 }
  0x96   :  { %v76_v50 = vor.u32 %v75_v39, %v74_v35  ;;  %v79_v51 = vor.u32 %v78_v41, %v77_v37  ;;  %v167_v55 = vsub.s32 32, %v166_v43  ;;  %vm80_vm3 = vcmp.lt.s32.totalorder %v61_v29, 1 }
  0x97   :  { %v181_v58 = vshll.u32 %v568_v36, %v166_v43  ;;  %v67_v59 = vor.u32 %v66_v47, %v65_v45  ;;  %v70_v60 = vor.u32 %v69_v49, %v68_v52  ;;  %v73_v0 = vor.u32 %v72_v53, %v71_v56 }
  0x98   :  { %v89_v57 = vsel %vm83_vm2, %v76_v50, 920167782  ;;  %v93_v61 = vsel %vm83_vm2, %v79_v51, 1326507024  ;;  %v179_v62 = vshrl.u32 %v568_v36, %v167_v55  ;;  %v182_v63 = vshrl.u32 %v569_v40, %v167_v55 }
  0x99   :  { %v178_v1 = vshll.u32 %v567_v34, %v166_v43  ;;  %v64_v2 = vshrl.u32 %v570_v44, %v63_v32  ;;  %vm82_vm4 = vcmp.lt.s32.totalorder %v61_v29, 3  ;;  %v88_v3 = vsel %vm80_vm3, %v67_v59, %v70_v60 }
  0x9a   :  { %v183_v4 = vor.u32 %v182_v63, %v181_v58  ;;  %vm81_vm5 = vcmp.lt.s32.totalorder %v61_v29, 2  ;;  %v85_v5 = vsel %vm83_vm2, %v73_v0, 2102212464  ;;  %v90_v6 = vsel %vm82_vm4, %v73_v0, %v89_v57 }
  0x9b   :  { %vm187_vm6 = vcmp.lt.s32.totalorder %v622_v54, 4  ;;  %v91_v7 = vsel %vm81_vm5, %v88_v3, %v90_v6  ;;  %v92_v8 = vsel %vm80_vm3, %v70_v60, %v73_v0  ;;  %v94_v9 = vsel %vm82_vm4, %v76_v50, %v93_v61 }
  0x9c   :  { %v180_v11 = vor.u32 %v179_v62, %v178_v1  ;;  %v84_v12 = vsel %vm80_vm3, %v64_v2, %v67_v59  ;;  %v86_v13 = vsel %vm82_vm4, %v70_v60, %v85_v5  ;;  %v95_v14 = vsel %vm81_vm5, %v92_v8, %v94_v9 }
  0x9d   :  { %v635_v15 = vmul.u32.u64.low %v618_v33, %v95_v14  ;;  %v636_v17 = vmul.u32.u64.high %v618_v33, %v95_v14, %v635_v15  ;;  %v639_v19 = vmul.u32.u64.low %v618_v33, %v91_v7  ;;  %v640_v20 = vmul.u32.u64.high %v618_v33, %v91_v7, %v639_v19 }
  0x9e   :  { %v197_v21 = vsel %vm187_vm6, %v183_v4, 1326507024  ;;  %v169_v23 = vshll.u32 %v570_v44, %v166_v43  ;;  %v170_v24 = vshrl.u32 %v571_v46, %v167_v55  ;;  %v87_v25 = vsel %vm81_vm5, %v84_v12, %v86_v13 }
  0x9f   :  { %v172_v26 = vshll.u32 %v571_v46, %v166_v43  ;;  %v173_v27 = vshrl.u32 %v572_v48, %v167_v55  ;;  %v176_v28 = vshrl.u32 %v567_v34, %v167_v55  ;;  %v193_v30 = vsel %vm187_vm6, %v180_v11, 920167782 }
  0xa0   :  { %v171_v31 = vor.u32 %v170_v24, %v169_v23  ;;  %v175_v32 = vshll.u32 %v572_v48, %v166_v43  ;;  %v200_v35 = vshll.u32 %v160_v38, 8  ;;  %vm105_vm7 = vc.u32 %v636_v17, %v639_v19 }
  0xa1   :  { %v106_v36 = vadd.s32 1, %v640_v20  ;;  %v174_v37 = vor.u32 %v173_v27, %v172_v26  ;;  %vm186_vm8 = vcmp.lt.s32.totalorder %v622_v54, 3  ;;  %v103_v39 = vmul.u32 %v618_v33, %v87_v25 }
  0xa2   :  { %v177_v29 = vor.u32 %v176_v28, %v175_v32  ;;  %vm184_vm9 = vcmp.lt.s32.totalorder %v622_v54, 1  ;;  %v198_v34 = vsel %vm186_vm8, %v180_v11, %v197_v21  ;;  %v168_v41 = vshrl.u32 %v570_v44, %v167_v55 }
  0xa3   :  { %v107_v40 = vsel %vm105_vm7, %v106_v36, %v640_v20  ;;  %vm185_vm10 = vcmp.lt.s32.totalorder %v622_v54, 2  ;;  %v192_v38 = vsel %vm184_vm9, %v171_v31, %v174_v37  ;;  %v104_v7 = vadd.s32 %v639_v19, %v636_v17 }
  0xa4   :  { %v108_v42 = vadd.s32 %v107_v40, %v103_v39  ;;  %v189_v43 = vsel %vm187_vm6, %v177_v29, 2102212464  ;;  %v194_v33 = vsel %vm186_vm8, %v177_v29, %v193_v30  ;;  %v196_v45 = vsel %vm184_vm9, %v174_v37, %v177_v29 }
  0xa5   :  { %v188_v46 = vsel %vm184_vm9, %v168_v41, %v171_v31  ;;  %v195_v47 = vsel %vm185_vm10, %v192_v38, %v194_v33  ;;  %v199_v48 = vsel %vm185_vm10, %v196_v45, %v198_v34  ;;  %v190_v50 = vsel %vm186_vm8, %v174_v37, %v189_v43 }
  0xa6   :  { %v109_v49 = vadd.s32 536870912, %v108_v42  ;;  %v664_v51 = vmul.u32.u64.low %v200_v35, %v199_v48  ;;  %v665_v44 = vmul.u32.u64.high %v200_v35, %v199_v48, %v664_v51  ;;  %v191_v56 = vsel %vm185_vm10, %v188_v46, %v190_v50 }
  0xa7   :  { %v667_v52 = vmul.u32.u64.low %v200_v35, %v195_v47  ;;  %v668_v53 = vmul.u32.u64.high %v200_v35, %v195_v47, %v667_v52  ;;  %v207_v60 = vmul.u32 %v200_v35, %v191_v56  ;;  %vm153_vm1 = vcmp.le.f32.partialorder %v152_v22, 0.7853982 }
  0xa8   :  { %v110_v55 = vshrl.u32 %v109_v49, 30  ;;  %vm256_vm3 = vcmask 130048   ;;  %vm140_vm9 = vweird.f32 %v604_v10 }
  0xa9   :  { %vm209_vm11 = vc.u32 %v665_v44, %v667_v52  ;;  %v210_v58 = vadd.s32 1, %v668_v53  ;;  %v208_v17 = vadd.s32 %v667_v52, %v665_v44 }
  0xaa   :  { %v111_v57 = vshll.u32 %v110_v55, 30  ;;  %v134_v30 = vsub.s32 4, %v110_v55 }
  0xab   :  { %v211_v61 = vsel %vm209_vm11, %v210_v58, %v668_v53 }
  0xac   :  { %v112_v59 = vsub.s32 %v108_v42, %v111_v57  ;;  %v212_v54 = vadd.s32 %v211_v61, %v207_v60  ;;  %v135_v34 = vsel %vm50_vm14, %v134_v30, %v110_v55 }
  0xad   :  { %v137_v42 = vsel %vm49_vm15, 0, %v135_v34 }
  0xae   :  { %v114_v62 = vsub.s32 0, %v112_v59  ;;  %v213_v0 = vadd.s32 536870912, %v212_v54  ;;  %v141_v46 = vadd.s32 3, %v137_v42  ;;  %v352_v49 = vand.u32 3, %v137_v42 }
  0xb0   :  { %v495_v63 = vmin.u32 %v114_v62, %v112_v59  ;;  %v214_v2 = vshrl.u32 %v213_v0, 30  ;;  %v142_v51 = vand.u32 3, %v141_v46  ;;  %vm357_vm2 = vcmp.eq.s32.totalorder %v352_v49, 2 }
  0xb1   :  { %vm354_vm6 = vcmp.eq.s32.totalorder %v352_v49, 0  ;;  %vm353_vm8 = vcmp.lt.s32.totalorder %v352_v49, 2 }
  0xb2   :  { %v116_v1 = vclz %v495_v63  ;;  %v215_v4 = vshll.u32 %v214_v2, 30  ;;  %v238_v48 = vsub.s32 4, %v214_v2  ;;  %vm147_vm4 = vcmp.eq.s32.totalorder %v142_v51, 2 }
  0xb3   :  { %vm144_vm5 = vcmp.eq.s32.totalorder %v142_v51, 0  ;;  %vm143_vm7 = vcmp.lt.s32.totalorder %v142_v51, 2 }
  0xb4   :  { %v496_v3 = vadd.s32 4294967294, %v116_v1  ;;  %v216_v6 = vsub.s32 %v212_v54, %v215_v4  ;;  %v239_v44 = vsel %vm154_vm0, %v238_v48, %v214_v2 }
  0xb5   :  { %v241_v58 = vsel %vm153_vm1, 0, %v239_v44 }
  0xb6   :  { %vm497_vm12 = vcmp.lt.s32.totalorder %v496_v3, 0  ;;  %v218_v11 = vsub.s32 0, %v216_v6  ;;  %v245_v63 = vadd.s32 3, %v241_v58 }
  0xb7   :  { %v119_v5 = vsel %vm497_vm12, 0, %v496_v3  ;;  %v455_v3 = vand.u32 3, %v241_v58 }
  0xb8   :  { %v120_v8 = vsub.s32 32, %v119_v5  ;;  %v124_v9 = vsub.s32 4294967266, %v119_v5  ;;  %v121_v12 = vshll.u32 %v112_v59, %v119_v5  ;;  %v499_v15 = vmin.u32 %v218_v11, %v216_v6 }
  0xb9   :  { %v246_v2 = vand.u32 3, %v245_v63  ;;  %vm460_vm11 = vcmp.eq.s32.totalorder %v455_v3, 2 }
  0xba   :  { %v122_v13 = vshrl.u32 %v104_v7, %v120_v8  ;;  %v125_v14 = vadd.s32 127, %v124_v9  ;;  %v220_v23 = vclz %v499_v15 }
  0xbb   :  { %vm251_vm10 = vcmp.eq.s32.totalorder %v246_v2, 2  ;;  %vm248_vm12 = vcmp.eq.s32.totalorder %v246_v2, 0 }
  0xbc   :  { %v123_v20 = vor.u32 %v122_v13, %v121_v12  ;;  %v126_v21 = vshll.u32 %v125_v14, 23  ;;  %v500_v25 = vadd.s32 4294967294, %v220_v23 }
  0xbe   :  { %v127_v24 = vor.u32 4788187, %v126_v21  ;;  %v130_v27 = vcvt.s32.f32 %v123_v20  ;;  %vm501_vm13 = vcmp.lt.s32.totalorder %v500_v25, 0 }
  0xbf   :  { %v223_v31 = vsel %vm501_vm13, 0, %v500_v25  ;;  %vm457_vm13 = vcmp.eq.s32.totalorder %v455_v3, 0 }
  0xc0   :  { %v128_v26 = vand.u32 2147483647, %v127_v24  ;;  %v224_v19 = vsub.s32 32, %v223_v31  ;;  %v228_v32 = vsub.s32 4294967266, %v223_v31  ;;  %v225_v36 = vshll.u32 %v216_v6, %v223_v31 }
  0xc2   :  { %v131_v28 = vmul.f32 %v130_v27, %v128_v26  ;;  %v226_v37 = vshrl.u32 %v208_v17, %v224_v19  ;;  %v229_v39 = vadd.s32 127, %v228_v32 }
  0xc4   :  { %v132_v35 = vxor.u32 2147483648, %v131_v28  ;;  %v227_v41 = vor.u32 %v226_v37, %v225_v36  ;;  %v230_v38 = vshll.u32 %v229_v39, 23 }
  0xc6   :  { %v133_v29 = vsel %vm50_vm14, %v132_v35, %v131_v28  ;;  %v231_v43 = vor.u32 4788187, %v230_v38  ;;  %v234_v45 = vcvt.s32.f32 %v227_v41  ;;  %vm247_vm14 = vcmp.lt.s32.totalorder %v246_v2, 2 }
  0xc7   :  { %v136_v40 = vsel %vm49_vm15, %v604_v10, %v133_v29  ;;  %vm456_vm15 = vcmp.lt.s32.totalorder %v455_v3, 2 }
  0xc8   :  { %533 = vcosq.f32 %v136_v40  ;;  %v232_v33 = vand.u32 2147483647, %v231_v43 }
  0xc9   :  { %535 = vsinq.f32 %v136_v40 }
  0xca   :  { %v235_v47 = vmul.f32 %v234_v45, %v232_v33 }
  0xcc   :  { %v236_v50 = vxor.u32 2147483648, %v235_v47 }
  0xce   :  { %v237_v16 = vsel %vm154_vm0, %v236_v50, %v235_v47  ;;  %vm244_vm0 = vweird.f32 %v608_v18 }
  0xcf   :  { %v240_v53 = vsel %vm153_vm1, %v608_v18, %v237_v16  ;;  %vm473_vm1 = vcmask 261248  }
  0xd0   :  { %537 = vcosq.f32 %v240_v53 }
  0xd1   :  { %539 = vsinq.f32 %v240_v53 }
  0xd2   :  { %v534_v52 = vpop.eup %533 }
  0xd3   :  { %v536_v55 = vpop.eup %535  ;;  %v148_v56 = vxor.u32 2147483648, %v534_v52 }
  0xd4   :  { %v145_v57 = vxor.u32 2147483648, %v536_v55 }
  0xd5   :  { %v359_v59 = vsel %vm357_vm2, %v148_v56, %v536_v55  ;;  %v149_v60 = vsel %vm147_vm4, %v148_v56, %v536_v55 }
  0xd6   :  { %v356_v22 = vsel %vm354_vm6, %v534_v52, %v145_v57  ;;  %v146_v61 = vsel %vm144_vm5, %v534_v52, %v145_v57 }
  0xd7   :  { %v360_v62 = vsel %vm353_vm8, %v356_v22, %v359_v59  ;;  %v150_v54 = vsel %vm143_vm7, %v146_v61, %v149_v60 }
  0xd8   :  { %v361_v0 = vsel %vm140_vm9, nan, %v360_v62  ;;  %v151_v1 = vsel %vm140_vm9, nan, %v150_v54 }
  0xd9   :  { %467 = vrot.lane.b32.xlu0 %v361_v0, %s573_s0  ;;  %257 = vst.msk [vmem:[#allocation2] sm:$0xff] %vm256_vm3, %v151_v1 }
  0xda   :  { %v538_v4 = vpop.eup %537 }
  0xdb   :  { %v540_v5 = vpop.eup %539  ;;  %v252_v6 = vxor.u32 2147483648, %v538_v4 }
  0xdc   :  { %v249_v7 = vxor.u32 2147483648, %v540_v5 }
  0xdd   :  { %v462_v10 = vsel %vm460_vm11, %v252_v6, %v540_v5  ;;  %v253_v8 = vsel %vm251_vm10, %v252_v6, %v540_v5 }
  0xde   :  { %v459_v9 = vsel %vm457_vm13, %v538_v4, %v249_v7  ;;  %v250_v11 = vsel %vm248_vm12, %v538_v4, %v249_v7 }
  0xdf   :  { %v463_v12 = vsel %vm456_vm15, %v459_v9, %v462_v10  ;;  %v254_v13 = vsel %vm247_vm14, %v250_v11, %v253_v8 }
  0xe0   :  { %v464_v14 = vsel %vm244_vm0, nan, %v463_v12  ;;  %v255_v15 = vsel %vm244_vm0, nan, %v254_v13 }
  0xe1   :  { %469 = vrot.lane.b32.xlu1 %v464_v14, %s573_s0  ;;  %258 = vst.msk [vmem:[#allocation2 + $0x8] sm:$0xff] %vm256_vm3, %v255_v15 }
 0x14b   :  { %v468_v20 = vpop.permute.xlu0 %467 }
 0x14c   :  { %474 = vst.msk [vmem:[#allocation2] sm:$0xff] %vm473_vm1, %v468_v20 }
 0x153   :  { %v470_v21 = vpop.permute.xlu1 %469 }
 0x154   :  { %475 = vst.msk [vmem:[#allocation2 + $0x8] sm:$0xff] %vm473_vm1, %v470_v21 }
 0x155   :  { %552 = shalt.err (!%p549_p4)
}
 0x156   :  { %s553_s21 = scalar_lea.hbm %s701_s2, 256 }
 0x157   :  { %p554_p5 = scmp.ne.s32.totalorder %s701_s2, %s553_s21  ;;  %p557_p6 = scmp.lt.u32.totalorder %s553_s21, %s701_s2 }
 0x159   :  { %p559_p7 = pnand %p557_p6, %p554_p5 }
 0x15b   :  { %562 = shalt.err (!%p559_p7)
}
 0x15c   :  { %s575_s26 = smov 128   ;;  %s576_s27 = smov 8  }
 0x15d   :  { %487 = dma.vmem_to_hbm [thread:$0]  %s482_s17, 256, %s701_s2, [#allocation3], %s575_s26, %s575_s26, %s576_s27  }
 0x15e   :  { %563 = dma.done.wait [#allocation3], 256  }
 0x15f   :  { %564 = vsyncadd [#allocation3], 4294967040 }
 0x160   :  { %491 = vsyncpa [#allocation3], 1 }

</bundles_post_ra>
